<compile_context>
chip_gen: v7x
topology: tpu7x:2x2x1
jax: 0.10.0
libtpu: 0.0.40
codegen_flags: <defaults>
</compile_context>

<pallas_src>
import math
import functools

import jax
import jax.numpy as jnp
import numpy as np
from jax import lax
from jax.experimental import pallas as pl
from jax.experimental.pallas import tpu as pltpu


# ----------------------------------------------------------------------------
# Fused kernel: token-shift + LoRA + QKV proj + RoPE + causal attn + out-proj
# (one batch element per grid step)
# ----------------------------------------------------------------------------
def _csa_kernel(x_ref, a_ref, b_ref, lam_ref, wq_ref, wk_ref, wv_ref,
                wp_ref, bp_ref, cq_ref, sq_ref, ck_ref, sk_ref,
                y_ref, ctx_ref, *, n_heads: int, head_dim: int):
    x = x_ref[0]                                   # (T, D) f32
    T, D = x.shape
    half = head_dim // 2

    # ---- token shift: xx[t] = x[t-1], xx[0] = 0   (nn.ZeroPad2d((0, 0, 1, -1)))
    # sublane roll (XLU) + first-row mask instead of a concatenate.
    row = lax.broadcasted_iota(jnp.int32, (T, 1), 0)
    xx = jnp.where(row == 0, 0.0, pltpu.roll(x, shift=1, axis=0))
    xxx = xx - x

    # ---- fused LoRA: h = tanh(x @ A_all); lora = lambda_all + h @ B_blockdiag
    xb = x.astype(jnp.bfloat16)
    hid = jnp.tanh(jnp.dot(xb, a_ref[...], preferred_element_type=jnp.float32))
    lora = lam_ref[...] + jnp.dot(hid.astype(jnp.bfloat16), b_ref[...],
                                  preferred_element_type=jnp.float32)   # (T, 3D) f32

    q_in = (x + xxx * lora[:, 0:D]).astype(jnp.bfloat16)
    k_in = (x + xxx * lora[:, D:2 * D]).astype(jnp.bfloat16)
    v_in = (x + xxx * lora[:, 2 * D:3 * D]).astype(jnp.bfloat16)

    # ---- Q/K/V projections (pre-transposed bf16 weights, f32 accumulation)
    q = jnp.dot(q_in, wq_ref[...], preferred_element_type=jnp.float32)   # (T, D) f32
    k = jnp.dot(k_in, wk_ref[...], preferred_element_type=jnp.float32)
    v = jnp.dot(v_in, wv_ref[...],
                preferred_element_type=jnp.float32).astype(jnp.bfloat16)

    # RoPE tables: cq/sq already include the 1/sqrt(hd) attention scale.
    cq = cq_ref[...]; sq = sq_ref[...]             # (T, hd) f32
    ck = ck_ref[...]; sk = sk_ref[...]             # (T, hd) f32
    # NOTE: RoPE kept in f32 (safe on v5e, which has no bf16 VALU); on v6e/v7x this
    # elementwise block could be done in bf16 to halve VPU work.

    rr = lax.broadcasted_iota(jnp.int32, (T, T), 0)
    cc = lax.broadcasted_iota(jnp.int32, (T, T), 1)
    causal = rr >= cc

    # ---- per-head RoPE + causal attention; n_heads is a compile-time constant so
    #      all lane slices are static (clean lowering, no dynamic lane offsets).
    for h in range(n_heads):
        lo, hi = h * head_dim, (h + 1) * head_dim
        qh = q[:, lo:hi]                           # (T, hd) f32
        kh = k[:, lo:hi]
        vh = v[:, lo:hi]                           # (T, hd) bf16

        # rotate-half via XLU lane roll (shift = hd/2 -> direction irrelevant)
        qr = (qh * cq + pltpu.roll(qh, shift=half, axis=1) * sq).astype(jnp.bfloat16)
        kr = (kh * ck + pltpu.roll(kh, shift=half, axis=1) * sk).astype(jnp.bfloat16)

        # q @ k.T without an in-kernel transpose: contract dim 1 of both operands
        s = lax.dot_general(qr, kr, (((1,), (1,)), ((), ())),
                            preferred_element_type=jnp.float32)          # (T, T) f32
        s = jnp.where(causal, s, -1e30)

        m = jnp.max(s, axis=-1, keepdims=True)
        p = jnp.exp(s - m)                          # un-normalized probabilities
        l = jnp.sum(p, axis=-1, keepdims=True)
        o = jnp.dot(p.astype(jnp.bfloat16), vh,
                    preferred_element_type=jnp.float32)                   # (T, hd) f32
        # deferred softmax normalization (T*hd multiplies instead of T*T)
        o = o * pl.reciprocal(l, approx=True)
        # TODO(synk): attention dropout not implemented (dropout_p fixed to 0.0)

        ctx_ref[:, lo:hi] = o.astype(jnp.bfloat16)  # pack head into its lane slice

    # ---- single full-D out-projection (MXU contraction over D, not hd)
    y = jnp.dot(ctx_ref[...], wp_ref[...],
                preferred_element_type=jnp.float32) + bp_ref[...]
    y_ref[0] = y.astype(y_ref.dtype)


# ----------------------------------------------------------------------------
# Wrapper
# ----------------------------------------------------------------------------
def causal_self_attention(x, params, *, n_heads: int):
    B, T, D = x.shape
    hd = D // n_heads
    L = params["aq"].shape[0]
    bf16, f32 = jnp.bfloat16, jnp.float32
    scale = 1.0 / math.sqrt(hd)

    # ---- host-side weight prep (pre-transposed, fused, bf16) ----
    a_all = jnp.concatenate(
        [params["aq"].T, params["ak"].T, params["av"].T], axis=1).astype(bf16)   # (D, 3L)
    b_bd = jnp.zeros((3 * L, 3 * D), f32)
    b_bd = b_bd.at[0:L, 0:D].set(params["bq"].T)
    b_bd = b_bd.at[L:2 * L, D:2 * D].set(params["bk"].T)
    b_bd = b_bd.at[2 * L:3 * L, 2 * D:3 * D].set(params["bv"].T)
    b_bd = b_bd.astype(bf16)                                                      # (3L, 3D)
    lam_all = jnp.concatenate(
        [params["lq"], params["lk"], params["lv"]], axis=1).astype(f32)           # (1, 3D)

    wq_t = params["wq"].T.astype(bf16)                                            # (D, D)
    wk_t = params["wk"].T.astype(bf16)
    wv_t = params["wv"].T.astype(bf16)
    wp_t = params["wp"].T.astype(bf16)                                            # (D, D)
    bp = params["bp"].reshape(1, D).astype(f32)

    # full-width RoPE tables: y = t * [cos|cos] + rotate_half(t) * [-sin|sin]
    # (1/sqrt(hd) attention scale folded into the q tables host-side)
    sin = params["pos_sin"][:T]
    cos = params["pos_cos"][:T]
    cos_k = jnp.concatenate([cos, cos], axis=1).astype(f32)                       # (T, hd)
    sin_k = jnp.concatenate([-sin, sin], axis=1).astype(f32)                      # (T, hd)
    cos_q = (cos_k * scale).astype(f32)
    sin_q = (sin_k * scale).astype(f32)

    weights = (a_all, b_bd, lam_all, wq_t, wk_t, wv_t, wp_t, bp,
               cos_q, sin_q, cos_k, sin_k)

    # explicit scoped-VMEM limit from the actual resident buffers (+ in-body headroom)
    resident = 2 * sum(int(w.size) * w.dtype.itemsize for w in weights)   # dbl-buffered
    resident += 2 * 2 * T * D * 4                                          # x in + y out
    resident += T * D * 2                                                  # ctx scratch
    body = T * 3 * D * 4 + 4 * T * D * 4 + 2 * T * T * 4 + 4 * T * hd * 4  # live temps
    vmem_limit = int(max(resident + 4 * body + (1 << 20), 32 << 20))

    full = lambda shape: pl.BlockSpec(shape, lambda b: (0,) * len(shape))
    kernel = functools.partial(_csa_kernel, n_heads=n_heads, head_dim=hd)

    y = pl.pallas_call(
        kernel,
        out_shape=jax.ShapeDtypeStruct((B, T, D), f32),
        grid_spec=pltpu.PrefetchScalarGridSpec(
            num_scalar_prefetch=0,
            grid=(B,),
            in_specs=[pl.BlockSpec((1, T, D), lambda b: (b, 0, 0))]
                     + [full(w.shape) for w in weights],
            out_specs=pl.BlockSpec((1, T, D), lambda b: (b, 0, 0)),
            scratch_shapes=[pltpu.VMEM((T, D), bf16)],      # per-batch context buffer
        ),
        compiler_params=pltpu.CompilerParams(
            dimension_semantics=("parallel",),
            vmem_limit_bytes=vmem_limit),
    )(x, *weights)
    return y


# ----------------------------------------------------------------------------
# Pure-JAX reference (mirrors the PyTorch forward semantics, f32)
# ----------------------------------------------------------------------------
def reference_forward(x, params, *, n_heads: int):
    B, T, D = x.shape
    hd = D // n_heads
    half = hd // 2

    xx = jnp.concatenate([jnp.zeros((B, 1, D), x.dtype), x[:, :-1, :]], axis=1)
    xxx = xx - x

    def lora(a, b, lam):
        return lam + jnp.tanh(x @ a.T) @ b.T

    q = (x + xxx * lora(params["aq"], params["bq"], params["lq"])) @ params["wq"].T
    k = (x + xxx * lora(params["ak"], params["bk"], params["lk"])) @ params["wk"].T
    v = (x + xxx * lora(params["av"], params["bv"], params["lv"])) @ params["wv"].T

    def split(t):
        return t.reshape(B, T, n_heads, hd).transpose(0, 2, 1, 3)

    sin = params["pos_sin"][:T]
    cos = params["pos_cos"][:T]

    def rope(t):
        tr, ti = t[..., :half], t[..., half:]
        return jnp.concatenate([tr * cos - ti * sin, tr * sin + ti * cos], axis=-1)

    qh, kh, vh = rope(split(q)), rope(split(k)), split(v)

    s = jnp.einsum("bhqd,bhkd->bhqk", qh, kh) / math.sqrt(hd)
    mask = jnp.tril(jnp.ones((T, T), bool))
    s = jnp.where(mask, s, -1e30)
    p = jax.nn.softmax(s, axis=-1)
    o = jnp.einsum("bhqk,bhkd->bhqd", p, vh).transpose(0, 2, 1, 3).reshape(B, T, D)
    return o @ params["wp"].T + params["bp"]


# ----------------------------------------------------------------------------
# Deterministic parameter construction
# ----------------------------------------------------------------------------
def make_params(key, dim, lora_dim, head_dim, max_length):
    ks = jax.random.split(key, 16)
    n = lambda k, shape, std: (std * jax.random.normal(k, shape)).astype(jnp.float32)
    params = {
        "wq": n(ks[0], (dim, dim), 0.1),
        "wk": n(ks[1], (dim, dim), 0.1),
        "wv": n(ks[2], (dim, dim), 0.1),
        "wp": n(ks[3], (dim, dim), 0.1),
        "bp": n(ks[4], (1, dim), 0.1),
        "aq": n(ks[5], (lora_dim, dim), 0.001),
        "bq": n(ks[6], (dim, lora_dim), 0.001),
        "lq": n(ks[7], (1, dim), 1.0),
        "ak": n(ks[8], (lora_dim, dim), 0.001),
        "bk": n(ks[9], (dim, lora_dim), 0.001),
        "lk": n(ks[10], (1, dim), 1.0),
        "av": n(ks[11], (lora_dim, dim), 0.001),
        "bv": n(ks[12], (dim, lora_dim), 0.001),
        "lv": n(ks[13], (1, dim), 1.0),
    }
    positions = jnp.arange(max_length, dtype=jnp.float32)
    theta = 1.0 / (10000.0 ** (jnp.arange(0, head_dim, 2, dtype=jnp.float32) / head_dim))
    pt = positions[:, None] * theta[None, :]
    params["pos_sin"] = jnp.sin(pt).astype(jnp.float32)
    params["pos_cos"] = jnp.cos(pt).astype(jnp.float32)
    return params


if __name__ == "__main__":
    B, T, dim = 2, 8, 32
    n_heads, lora_dim, max_length = 4, 4, 16
    head_dim = dim // n_heads

    key = jax.random.PRNGKey(0)
    kx, kp = jax.random.split(key)
    x = jax.random.normal(kx, (B, T, dim), dtype=jnp.float32)
    params = make_params(kp, dim, lora_dim, head_dim, max_length)

    csa = jax.jit(functools.partial(causal_self_attention, n_heads=n_heads))
    out = jax.block_until_ready(csa(x, params))

    ref = reference_forward(x, params, n_heads=n_heads)
    np.testing.assert_allclose(np.asarray(out), np.asarray(ref), rtol=3e-2, atol=3e-2)
    assert out.shape == (B, T, dim)

    print("KERNEL_OK")
</pallas_src>

<mosaic_0001>
module attributes {stable_mosaic.version = 11 : i64} {
  func.func @_csa_kernel(%arg0: i32, %arg1: memref<1x8x32xf32, #tpu.memory_space<vmem>>, %arg2: memref<32x12xbf16, #tpu.memory_space<vmem>>, %arg3: memref<12x96xbf16, #tpu.memory_space<vmem>>, %arg4: memref<1x96xf32, #tpu.memory_space<vmem>>, %arg5: memref<32x32xbf16, #tpu.memory_space<vmem>>, %arg6: memref<32x32xbf16, #tpu.memory_space<vmem>>, %arg7: memref<32x32xbf16, #tpu.memory_space<vmem>>, %arg8: memref<32x32xbf16, #tpu.memory_space<vmem>>, %arg9: memref<1x32xf32, #tpu.memory_space<vmem>>, %arg10: memref<8x8xf32, #tpu.memory_space<vmem>>, %arg11: memref<8x8xf32, #tpu.memory_space<vmem>>, %arg12: memref<8x8xf32, #tpu.memory_space<vmem>>, %arg13: memref<8x8xf32, #tpu.memory_space<vmem>>, %arg14: memref<1x8x32xf32, #tpu.memory_space<vmem>>, %arg15: memref<8x32xbf16, #tpu.memory_space<vmem>>) attributes {dimension_semantics = [#tpu.dimension_semantics<parallel>], iteration_bounds = array<i64: 2>, scalar_prefetch = 0 : i64, scratch_operands = 1 : i64, tpu.core_type = #tpu.core_type<tc>, window_params = [{transform_indices = @transform_0, window_bounds = array<i64: 1, 8, 32>}, {pipeline_mode = #tpu.pipeline_mode<synchronous>, transform_indices = @transform_1, window_bounds = array<i64: 32, 12>}, {pipeline_mode = #tpu.pipeline_mode<synchronous>, transform_indices = @transform_2, window_bounds = array<i64: 12, 96>}, {pipeline_mode = #tpu.pipeline_mode<synchronous>, transform_indices = @transform_3, window_bounds = array<i64: 1, 96>}, {pipeline_mode = #tpu.pipeline_mode<synchronous>, transform_indices = @transform_4, window_bounds = array<i64: 32, 32>}, {pipeline_mode = #tpu.pipeline_mode<synchronous>, transform_indices = @transform_5, window_bounds = array<i64: 32, 32>}, {pipeline_mode = #tpu.pipeline_mode<synchronous>, transform_indices = @transform_6, window_bounds = array<i64: 32, 32>}, {pipeline_mode = #tpu.pipeline_mode<synchronous>, transform_indices = @transform_7, window_bounds = array<i64: 32, 32>}, {pipeline_mode = #tpu.pipeline_mode<synchronous>, transform_indices = @transform_8, window_bounds = array<i64: 1, 32>}, {pipeline_mode = #tpu.pipeline_mode<synchronous>, transform_indices = @transform_9, window_bounds = array<i64: 8, 8>}, {pipeline_mode = #tpu.pipeline_mode<synchronous>, transform_indices = @transform_10, window_bounds = array<i64: 8, 8>}, {pipeline_mode = #tpu.pipeline_mode<synchronous>, transform_indices = @transform_11, window_bounds = array<i64: 8, 8>}, {pipeline_mode = #tpu.pipeline_mode<synchronous>, transform_indices = @transform_12, window_bounds = array<i64: 8, 8>}, {transform_indices = @transform_13, window_bounds = array<i64: 1, 8, 32>}]} {
    %c0 = arith.constant 0 : index
    %c0_0 = arith.constant 0 : index
    %c0_1 = arith.constant 0 : index
    %0 = vector.load %arg1[%c0, %c0_0, %c0_1] : memref<1x8x32xf32, #tpu.memory_space<vmem>>, vector<1x8x32xf32>
    %1 = vector.shape_cast %0 : vector<1x8x32xf32> to vector<8x32xf32>
    %2 = tpu.iota {dimensions = array<i32: 0>} : vector<8x1xi32>
    %c0_i32 = arith.constant 0 : i32
    %3 = vector.broadcast %c0_i32 : i32 to vector<8x1xi32>
    %4 = arith.cmpi eq, %2, %3 : vector<8x1xi32>
    %c1_i32 = arith.constant 1 : i32
    %5 = tpu.dynamic_rotate %1 by %c1_i32 dim 0 : vector<8x32xf32>, i32 -> vector<8x32xf32>
    %cst = arith.constant 0.000000e+00 : f32
    %6 = vector.shape_cast %4 : vector<8x1xi1> to vector<8x1xi1>
    %7 = vector.broadcast %6 : vector<8x1xi1> to vector<8x32xi1>
    %8 = vector.broadcast %cst : f32 to vector<8x32xf32>
    %9 = arith.select %7, %8, %5 : vector<8x32xi1>, vector<8x32xf32>
    %10 = arith.subf %9, %1 : vector<8x32xf32>
    %11 = arith.truncf %1 : vector<8x32xf32> to vector<8x32xbf16>
    %c0_2 = arith.constant 0 : index
    %c0_3 = arith.constant 0 : index
    %12 = vector.load %arg2[%c0_2, %c0_3] : memref<32x12xbf16, #tpu.memory_space<vmem>>, vector<32x12xbf16>
    %cst_4 = arith.constant dense<0.000000e+00> : vector<8x12xf32>
    %13 = tpu.matmul %11, %12, %cst_4 {dimension_numbers = #tpu.dot_dimension_numbers<[1], [0], [0], [1], [0, 0, 1, 1], [], []>} : vector<8x32xbf16>, vector<32x12xbf16>, vector<8x12xf32> -> vector<8x12xf32>
    %14 = math.tanh %13 : vector<8x12xf32>
    %c0_5 = arith.constant 0 : index
    %c0_6 = arith.constant 0 : index
    %15 = vector.load %arg4[%c0_5, %c0_6] : memref<1x96xf32, #tpu.memory_space<vmem>>, vector<1x96xf32>
    %16 = arith.truncf %14 : vector<8x12xf32> to vector<8x12xbf16>
    %c0_7 = arith.constant 0 : index
    %c0_8 = arith.constant 0 : index
    %17 = vector.load %arg3[%c0_7, %c0_8] : memref<12x96xbf16, #tpu.memory_space<vmem>>, vector<12x96xbf16>
    %cst_9 = arith.constant dense<0.000000e+00> : vector<8x96xf32>
    %18 = tpu.matmul %16, %17, %cst_9 {dimension_numbers = #tpu.dot_dimension_numbers<[1], [0], [0], [1], [0, 0, 1, 1], [], []>} : vector<8x12xbf16>, vector<12x96xbf16>, vector<8x96xf32> -> vector<8x96xf32>
    %19 = vector.broadcast %15 : vector<1x96xf32> to vector<8x96xf32>
    %20 = arith.addf %19, %18 : vector<8x96xf32>
    %21 = vector.extract_strided_slice %20 {offsets = [0, 0], sizes = [8, 32], strides = [1, 1]} : vector<8x96xf32> to vector<8x32xf32>
    %22 = arith.mulf %10, %21 : vector<8x32xf32>
    %23 = arith.addf %1, %22 : vector<8x32xf32>
    %24 = arith.truncf %23 : vector<8x32xf32> to vector<8x32xbf16>
    %25 = vector.extract_strided_slice %20 {offsets = [0, 32], sizes = [8, 32], strides = [1, 1]} : vector<8x96xf32> to vector<8x32xf32>
    %26 = arith.mulf %10, %25 : vector<8x32xf32>
    %27 = arith.addf %1, %26 : vector<8x32xf32>
    %28 = arith.truncf %27 : vector<8x32xf32> to vector<8x32xbf16>
    %29 = vector.extract_strided_slice %20 {offsets = [0, 64], sizes = [8, 32], strides = [1, 1]} : vector<8x96xf32> to vector<8x32xf32>
    %30 = arith.mulf %10, %29 : vector<8x32xf32>
    %31 = arith.addf %1, %30 : vector<8x32xf32>
    %32 = arith.truncf %31 : vector<8x32xf32> to vector<8x32xbf16>
    %c0_10 = arith.constant 0 : index
    %c0_11 = arith.constant 0 : index
    %33 = vector.load %arg5[%c0_10, %c0_11] : memref<32x32xbf16, #tpu.memory_space<vmem>>, vector<32x32xbf16>
    %cst_12 = arith.constant dense<0.000000e+00> : vector<8x32xf32>
    %34 = tpu.matmul %24, %33, %cst_12 {dimension_numbers = #tpu.dot_dimension_numbers<[1], [0], [0], [1], [0, 0, 1, 1], [], []>} : vector<8x32xbf16>, vector<32x32xbf16>, vector<8x32xf32> -> vector<8x32xf32>
    %c0_13 = arith.constant 0 : index
    %c0_14 = arith.constant 0 : index
    %35 = vector.load %arg6[%c0_13, %c0_14] : memref<32x32xbf16, #tpu.memory_space<vmem>>, vector<32x32xbf16>
    %cst_15 = arith.constant dense<0.000000e+00> : vector<8x32xf32>
    %36 = tpu.matmul %28, %35, %cst_15 {dimension_numbers = #tpu.dot_dimension_numbers<[1], [0], [0], [1], [0, 0, 1, 1], [], []>} : vector<8x32xbf16>, vector<32x32xbf16>, vector<8x32xf32> -> vector<8x32xf32>
    %c0_16 = arith.constant 0 : index
    %c0_17 = arith.constant 0 : index
    %37 = vector.load %arg7[%c0_16, %c0_17] : memref<32x32xbf16, #tpu.memory_space<vmem>>, vector<32x32xbf16>
    %cst_18 = arith.constant dense<0.000000e+00> : vector<8x32xf32>
    %38 = tpu.matmul %32, %37, %cst_18 {dimension_numbers = #tpu.dot_dimension_numbers<[1], [0], [0], [1], [0, 0, 1, 1], [], []>} : vector<8x32xbf16>, vector<32x32xbf16>, vector<8x32xf32> -> vector<8x32xf32>
    %39 = arith.truncf %38 : vector<8x32xf32> to vector<8x32xbf16>
    %c0_19 = arith.constant 0 : index
    %c0_20 = arith.constant 0 : index
    %40 = vector.load %arg10[%c0_19, %c0_20] : memref<8x8xf32, #tpu.memory_space<vmem>>, vector<8x8xf32>
    %c0_21 = arith.constant 0 : index
    %c0_22 = arith.constant 0 : index
    %41 = vector.load %arg11[%c0_21, %c0_22] : memref<8x8xf32, #tpu.memory_space<vmem>>, vector<8x8xf32>
    %c0_23 = arith.constant 0 : index
    %c0_24 = arith.constant 0 : index
    %42 = vector.load %arg12[%c0_23, %c0_24] : memref<8x8xf32, #tpu.memory_space<vmem>>, vector<8x8xf32>
    %c0_25 = arith.constant 0 : index
    %c0_26 = arith.constant 0 : index
    %43 = vector.load %arg13[%c0_25, %c0_26] : memref<8x8xf32, #tpu.memory_space<vmem>>, vector<8x8xf32>
    %44 = tpu.iota {dimensions = array<i32: 0>} : vector<8x8xi32>
    %45 = tpu.iota {dimensions = array<i32: 1>} : vector<8x8xi32>
    %46 = arith.cmpi sge, %44, %45 : vector<8x8xi32>
    %47 = vector.extract_strided_slice %34 {offsets = [0, 0], sizes = [8, 8], strides = [1, 1]} : vector<8x32xf32> to vector<8x8xf32>
    %48 = vector.extract_strided_slice %36 {offsets = [0, 0], sizes = [8, 8], strides = [1, 1]} : vector<8x32xf32> to vector<8x8xf32>
    %49 = vector.extract_strided_slice %39 {offsets = [0, 0], sizes = [8, 8], strides = [1, 1]} : vector<8x32xbf16> to vector<8x8xbf16>
    %50 = arith.mulf %47, %40 : vector<8x8xf32>
    %c4_i32 = arith.constant 4 : i32
    %51 = tpu.dynamic_rotate %47 by %c4_i32 dim 1 : vector<8x8xf32>, i32 -> vector<8x8xf32>
    %52 = arith.mulf %51, %41 : vector<8x8xf32>
    %53 = arith.addf %50, %52 : vector<8x8xf32>
    %54 = arith.truncf %53 : vector<8x8xf32> to vector<8x8xbf16>
    %55 = arith.mulf %48, %42 : vector<8x8xf32>
    %c4_i32_27 = arith.constant 4 : i32
    %56 = tpu.dynamic_rotate %48 by %c4_i32_27 dim 1 : vector<8x8xf32>, i32 -> vector<8x8xf32>
    %57 = arith.mulf %56, %43 : vector<8x8xf32>
    %58 = arith.addf %55, %57 : vector<8x8xf32>
    %59 = arith.truncf %58 : vector<8x8xf32> to vector<8x8xbf16>
    %cst_28 = arith.constant dense<0.000000e+00> : vector<8x8xf32>
    %60 = tpu.matmul %54, %59, %cst_28 {dimension_numbers = #tpu.dot_dimension_numbers<[1], [1], [0], [0], [0, 0, 1, 0], [], []>} : vector<8x8xbf16>, vector<8x8xbf16>, vector<8x8xf32> -> vector<8x8xf32>
    %cst_29 = arith.constant -1.000000e+30 : f32
    %61 = vector.broadcast %cst_29 : f32 to vector<8x8xf32>
    %62 = arith.select %46, %60, %61 : vector<8x8xi1>, vector<8x8xf32>
    %cst_30 = arith.constant dense<0xFF800000> : vector<8xf32>
    %63 = vector.multi_reduction <maximumf>, %62, %cst_30 [1] : vector<8x8xf32> to vector<8xf32>
    %64 = vector.shape_cast %63 : vector<8xf32> to vector<8x1xf32>
    %65 = vector.broadcast %64 : vector<8x1xf32> to vector<8x8xf32>
    %66 = arith.subf %62, %65 : vector<8x8xf32>
    %67 = math.exp %66 : vector<8x8xf32>
    %cst_31 = arith.constant dense<0.000000e+00> : vector<8xf32>
    %68 = vector.multi_reduction <add>, %67, %cst_31 [1] : vector<8x8xf32> to vector<8xf32>
    %69 = vector.shape_cast %68 : vector<8xf32> to vector<8x1xf32>
    %70 = arith.truncf %67 : vector<8x8xf32> to vector<8x8xbf16>
    %cst_32 = arith.constant dense<0.000000e+00> : vector<8x8xf32>
    %71 = tpu.matmul %70, %49, %cst_32 {dimension_numbers = #tpu.dot_dimension_numbers<[1], [0], [0], [1], [0, 0, 1, 1], [], []>} : vector<8x8xbf16>, vector<8x8xbf16>, vector<8x8xf32> -> vector<8x8xf32>
    %72 = tpu.reciprocal %69 {approx = true} : vector<8x1xf32> -> vector<8x1xf32>
    %73 = vector.broadcast %72 : vector<8x1xf32> to vector<8x8xf32>
    %74 = arith.mulf %71, %73 : vector<8x8xf32>
    %75 = arith.truncf %74 : vector<8x8xf32> to vector<8x8xbf16>
    %c0_33 = arith.constant 0 : index
    %c0_34 = arith.constant 0 : index
    %76 = vector.load %arg15[%c0_33, %c0_34] : memref<8x32xbf16, #tpu.memory_space<vmem>>, vector<8x8xbf16>
    tpu.vector_store %arg15[%c0_33, %c0_34], %75 {strides = array<i32>} : memref<8x32xbf16, #tpu.memory_space<vmem>>, vector<8x8xbf16>,
    %77 = vector.extract_strided_slice %34 {offsets = [0, 8], sizes = [8, 8], strides = [1, 1]} : vector<8x32xf32> to vector<8x8xf32>
    %78 = vector.extract_strided_slice %36 {offsets = [0, 8], sizes = [8, 8], strides = [1, 1]} : vector<8x32xf32> to vector<8x8xf32>
    %79 = vector.extract_strided_slice %39 {offsets = [0, 8], sizes = [8, 8], strides = [1, 1]} : vector<8x32xbf16> to vector<8x8xbf16>
    %80 = arith.mulf %77, %40 : vector<8x8xf32>
    %c4_i32_35 = arith.constant 4 : i32
    %81 = tpu.dynamic_rotate %77 by %c4_i32_35 dim 1 : vector<8x8xf32>, i32 -> vector<8x8xf32>
    %82 = arith.mulf %81, %41 : vector<8x8xf32>
    %83 = arith.addf %80, %82 : vector<8x8xf32>
    %84 = arith.truncf %83 : vector<8x8xf32> to vector<8x8xbf16>
    %85 = arith.mulf %78, %42 : vector<8x8xf32>
    %c4_i32_36 = arith.constant 4 : i32
    %86 = tpu.dynamic_rotate %78 by %c4_i32_36 dim 1 : vector<8x8xf32>, i32 -> vector<8x8xf32>
    %87 = arith.mulf %86, %43 : vector<8x8xf32>
    %88 = arith.addf %85, %87 : vector<8x8xf32>
    %89 = arith.truncf %88 : vector<8x8xf32> to vector<8x8xbf16>
    %cst_37 = arith.constant dense<0.000000e+00> : vector<8x8xf32>
    %90 = tpu.matmul %84, %89, %cst_37 {dimension_numbers = #tpu.dot_dimension_numbers<[1], [1], [0], [0], [0, 0, 1, 0], [], []>} : vector<8x8xbf16>, vector<8x8xbf16>, vector<8x8xf32> -> vector<8x8xf32>
    %cst_38 = arith.constant -1.000000e+30 : f32
    %91 = vector.broadcast %cst_38 : f32 to vector<8x8xf32>
    %92 = arith.select %46, %90, %91 : vector<8x8xi1>, vector<8x8xf32>
    %cst_39 = arith.constant dense<0xFF800000> : vector<8xf32>
    %93 = vector.multi_reduction <maximumf>, %92, %cst_39 [1] : vector<8x8xf32> to vector<8xf32>
    %94 = vector.shape_cast %93 : vector<8xf32> to vector<8x1xf32>
    %95 = vector.broadcast %94 : vector<8x1xf32> to vector<8x8xf32>
    %96 = arith.subf %92, %95 : vector<8x8xf32>
    %97 = math.exp %96 : vector<8x8xf32>
    %cst_40 = arith.constant dense<0.000000e+00> : vector<8xf32>
    %98 = vector.multi_reduction <add>, %97, %cst_40 [1] : vector<8x8xf32> to vector<8xf32>
    %99 = vector.shape_cast %98 : vector<8xf32> to vector<8x1xf32>
    %100 = arith.truncf %97 : vector<8x8xf32> to vector<8x8xbf16>
    %cst_41 = arith.constant dense<0.000000e+00> : vector<8x8xf32>
    %101 = tpu.matmul %100, %79, %cst_41 {dimension_numbers = #tpu.dot_dimension_numbers<[1], [0], [0], [1], [0, 0, 1, 1], [], []>} : vector<8x8xbf16>, vector<8x8xbf16>, vector<8x8xf32> -> vector<8x8xf32>
    %102 = tpu.reciprocal %99 {approx = true} : vector<8x1xf32> -> vector<8x1xf32>
    %103 = vector.broadcast %102 : vector<8x1xf32> to vector<8x8xf32>
    %104 = arith.mulf %101, %103 : vector<8x8xf32>
    %105 = arith.truncf %104 : vector<8x8xf32> to vector<8x8xbf16>
    %c0_42 = arith.constant 0 : index
    %c8 = arith.constant 8 : index
    %106 = vector.load %arg15[%c0_42, %c8] : memref<8x32xbf16, #tpu.memory_space<vmem>>, vector<8x8xbf16>
    tpu.vector_store %arg15[%c0_42, %c8], %105 {strides = array<i32>} : memref<8x32xbf16, #tpu.memory_space<vmem>>, vector<8x8xbf16>,
    %107 = vector.extract_strided_slice %34 {offsets = [0, 16], sizes = [8, 8], strides = [1, 1]} : vector<8x32xf32> to vector<8x8xf32>
    %108 = vector.extract_strided_slice %36 {offsets = [0, 16], sizes = [8, 8], strides = [1, 1]} : vector<8x32xf32> to vector<8x8xf32>
    %109 = vector.extract_strided_slice %39 {offsets = [0, 16], sizes = [8, 8], strides = [1, 1]} : vector<8x32xbf16> to vector<8x8xbf16>
    %110 = arith.mulf %107, %40 : vector<8x8xf32>
    %c4_i32_43 = arith.constant 4 : i32
    %111 = tpu.dynamic_rotate %107 by %c4_i32_43 dim 1 : vector<8x8xf32>, i32 -> vector<8x8xf32>
    %112 = arith.mulf %111, %41 : vector<8x8xf32>
    %113 = arith.addf %110, %112 : vector<8x8xf32>
    %114 = arith.truncf %113 : vector<8x8xf32> to vector<8x8xbf16>
    %115 = arith.mulf %108, %42 : vector<8x8xf32>
    %c4_i32_44 = arith.constant 4 : i32
    %116 = tpu.dynamic_rotate %108 by %c4_i32_44 dim 1 : vector<8x8xf32>, i32 -> vector<8x8xf32>
    %117 = arith.mulf %116, %43 : vector<8x8xf32>
    %118 = arith.addf %115, %117 : vector<8x8xf32>
    %119 = arith.truncf %118 : vector<8x8xf32> to vector<8x8xbf16>
    %cst_45 = arith.constant dense<0.000000e+00> : vector<8x8xf32>
    %120 = tpu.matmul %114, %119, %cst_45 {dimension_numbers = #tpu.dot_dimension_numbers<[1], [1], [0], [0], [0, 0, 1, 0], [], []>} : vector<8x8xbf16>, vector<8x8xbf16>, vector<8x8xf32> -> vector<8x8xf32>
    %cst_46 = arith.constant -1.000000e+30 : f32
    %121 = vector.broadcast %cst_46 : f32 to vector<8x8xf32>
    %122 = arith.select %46, %120, %121 : vector<8x8xi1>, vector<8x8xf32>
    %cst_47 = arith.constant dense<0xFF800000> : vector<8xf32>
    %123 = vector.multi_reduction <maximumf>, %122, %cst_47 [1] : vector<8x8xf32> to vector<8xf32>
    %124 = vector.shape_cast %123 : vector<8xf32> to vector<8x1xf32>
    %125 = vector.broadcast %124 : vector<8x1xf32> to vector<8x8xf32>
    %126 = arith.subf %122, %125 : vector<8x8xf32>
    %127 = math.exp %126 : vector<8x8xf32>
    %cst_48 = arith.constant dense<0.000000e+00> : vector<8xf32>
    %128 = vector.multi_reduction <add>, %127, %cst_48 [1] : vector<8x8xf32> to vector<8xf32>
    %129 = vector.shape_cast %128 : vector<8xf32> to vector<8x1xf32>
    %130 = arith.truncf %127 : vector<8x8xf32> to vector<8x8xbf16>
    %cst_49 = arith.constant dense<0.000000e+00> : vector<8x8xf32>
    %131 = tpu.matmul %130, %109, %cst_49 {dimension_numbers = #tpu.dot_dimension_numbers<[1], [0], [0], [1], [0, 0, 1, 1], [], []>} : vector<8x8xbf16>, vector<8x8xbf16>, vector<8x8xf32> -> vector<8x8xf32>
    %132 = tpu.reciprocal %129 {approx = true} : vector<8x1xf32> -> vector<8x1xf32>
    %133 = vector.broadcast %132 : vector<8x1xf32> to vector<8x8xf32>
    %134 = arith.mulf %131, %133 : vector<8x8xf32>
    %135 = arith.truncf %134 : vector<8x8xf32> to vector<8x8xbf16>
    %c0_50 = arith.constant 0 : index
    %c16 = arith.constant 16 : index
    %136 = vector.load %arg15[%c0_50, %c16] : memref<8x32xbf16, #tpu.memory_space<vmem>>, vector<8x8xbf16>
    tpu.vector_store %arg15[%c0_50, %c16], %135 {strides = array<i32>} : memref<8x32xbf16, #tpu.memory_space<vmem>>, vector<8x8xbf16>,
    %137 = vector.extract_strided_slice %34 {offsets = [0, 24], sizes = [8, 8], strides = [1, 1]} : vector<8x32xf32> to vector<8x8xf32>
    %138 = vector.extract_strided_slice %36 {offsets = [0, 24], sizes = [8, 8], strides = [1, 1]} : vector<8x32xf32> to vector<8x8xf32>
    %139 = vector.extract_strided_slice %39 {offsets = [0, 24], sizes = [8, 8], strides = [1, 1]} : vector<8x32xbf16> to vector<8x8xbf16>
    %140 = arith.mulf %137, %40 : vector<8x8xf32>
    %c4_i32_51 = arith.constant 4 : i32
    %141 = tpu.dynamic_rotate %137 by %c4_i32_51 dim 1 : vector<8x8xf32>, i32 -> vector<8x8xf32>
    %142 = arith.mulf %141, %41 : vector<8x8xf32>
    %143 = arith.addf %140, %142 : vector<8x8xf32>
    %144 = arith.truncf %143 : vector<8x8xf32> to vector<8x8xbf16>
    %145 = arith.mulf %138, %42 : vector<8x8xf32>
    %c4_i32_52 = arith.constant 4 : i32
    %146 = tpu.dynamic_rotate %138 by %c4_i32_52 dim 1 : vector<8x8xf32>, i32 -> vector<8x8xf32>
    %147 = arith.mulf %146, %43 : vector<8x8xf32>
    %148 = arith.addf %145, %147 : vector<8x8xf32>
    %149 = arith.truncf %148 : vector<8x8xf32> to vector<8x8xbf16>
    %cst_53 = arith.constant dense<0.000000e+00> : vector<8x8xf32>
    %150 = tpu.matmul %144, %149, %cst_53 {dimension_numbers = #tpu.dot_dimension_numbers<[1], [1], [0], [0], [0, 0, 1, 0], [], []>} : vector<8x8xbf16>, vector<8x8xbf16>, vector<8x8xf32> -> vector<8x8xf32>
    %cst_54 = arith.constant -1.000000e+30 : f32
    %151 = vector.broadcast %cst_54 : f32 to vector<8x8xf32>
    %152 = arith.select %46, %150, %151 : vector<8x8xi1>, vector<8x8xf32>
    %cst_55 = arith.constant dense<0xFF800000> : vector<8xf32>
    %153 = vector.multi_reduction <maximumf>, %152, %cst_55 [1] : vector<8x8xf32> to vector<8xf32>
    %154 = vector.shape_cast %153 : vector<8xf32> to vector<8x1xf32>
    %155 = vector.broadcast %154 : vector<8x1xf32> to vector<8x8xf32>
    %156 = arith.subf %152, %155 : vector<8x8xf32>
    %157 = math.exp %156 : vector<8x8xf32>
    %cst_56 = arith.constant dense<0.000000e+00> : vector<8xf32>
    %158 = vector.multi_reduction <add>, %157, %cst_56 [1] : vector<8x8xf32> to vector<8xf32>
    %159 = vector.shape_cast %158 : vector<8xf32> to vector<8x1xf32>
    %160 = arith.truncf %157 : vector<8x8xf32> to vector<8x8xbf16>
    %cst_57 = arith.constant dense<0.000000e+00> : vector<8x8xf32>
    %161 = tpu.matmul %160, %139, %cst_57 {dimension_numbers = #tpu.dot_dimension_numbers<[1], [0], [0], [1], [0, 0, 1, 1], [], []>} : vector<8x8xbf16>, vector<8x8xbf16>, vector<8x8xf32> -> vector<8x8xf32>
    %162 = tpu.reciprocal %159 {approx = true} : vector<8x1xf32> -> vector<8x1xf32>
    %163 = vector.broadcast %162 : vector<8x1xf32> to vector<8x8xf32>
    %164 = arith.mulf %161, %163 : vector<8x8xf32>
    %165 = arith.truncf %164 : vector<8x8xf32> to vector<8x8xbf16>
    %c0_58 = arith.constant 0 : index
    %c24 = arith.constant 24 : index
    %166 = vector.load %arg15[%c0_58, %c24] : memref<8x32xbf16, #tpu.memory_space<vmem>>, vector<8x8xbf16>
    tpu.vector_store %arg15[%c0_58, %c24], %165 {strides = array<i32>} : memref<8x32xbf16, #tpu.memory_space<vmem>>, vector<8x8xbf16>,
    %c0_59 = arith.constant 0 : index
    %c0_60 = arith.constant 0 : index
    %167 = vector.load %arg15[%c0_59, %c0_60] : memref<8x32xbf16, #tpu.memory_space<vmem>>, vector<8x32xbf16>
    %c0_61 = arith.constant 0 : index
    %c0_62 = arith.constant 0 : index
    %168 = vector.load %arg8[%c0_61, %c0_62] : memref<32x32xbf16, #tpu.memory_space<vmem>>, vector<32x32xbf16>
    %cst_63 = arith.constant dense<0.000000e+00> : vector<8x32xf32>
    %169 = tpu.matmul %167, %168, %cst_63 {dimension_numbers = #tpu.dot_dimension_numbers<[1], [0], [0], [1], [0, 0, 1, 1], [], []>} : vector<8x32xbf16>, vector<32x32xbf16>, vector<8x32xf32> -> vector<8x32xf32>
    %c0_64 = arith.constant 0 : index
    %c0_65 = arith.constant 0 : index
    %170 = vector.load %arg9[%c0_64, %c0_65] : memref<1x32xf32, #tpu.memory_space<vmem>>, vector<1x32xf32>
    %171 = vector.broadcast %170 : vector<1x32xf32> to vector<8x32xf32>
    %172 = arith.addf %169, %171 : vector<8x32xf32>
    %c0_66 = arith.constant 0 : index
    %c0_67 = arith.constant 0 : index
    %c0_68 = arith.constant 0 : index
    %173 = vector.load %arg14[%c0_66, %c0_67, %c0_68] : memref<1x8x32xf32, #tpu.memory_space<vmem>>, vector<1x8x32xf32>
    %174 = vector.shape_cast %173 : vector<1x8x32xf32> to vector<8x32xf32>
    %175 = vector.shape_cast %172 : vector<8x32xf32> to vector<1x8x32xf32>
    tpu.vector_store %arg14[%c0_66, %c0_67, %c0_68], %175 {strides = array<i32>} : memref<1x8x32xf32, #tpu.memory_space<vmem>>, vector<1x8x32xf32>,
    return
  }
  func.func @transform_0(%arg0: i32) -> (i32, i32, i32) {
    %c0_i32 = arith.constant 0 : i32
    %c0_i32_0 = arith.constant 0 : i32
    %c0_i32_1 = arith.constant 0 : i32
    return %arg0, %c0_i32, %c0_i32_0 : i32, i32, i32
  }
  func.func @transform_1(%arg0: i32) -> (i32, i32) {
    %c0_i32 = arith.constant 0 : i32
    %c0_i32_0 = arith.constant 0 : i32
    %c0_i32_1 = arith.constant 0 : i32
    return %c0_i32, %c0_i32_0 : i32, i32
  }
  func.func @transform_2(%arg0: i32) -> (i32, i32) {
    %c0_i32 = arith.constant 0 : i32
    %c0_i32_0 = arith.constant 0 : i32
    %c0_i32_1 = arith.constant 0 : i32
    return %c0_i32, %c0_i32_0 : i32, i32
  }
  func.func @transform_3(%arg0: i32) -> (i32, i32) {
    %c0_i32 = arith.constant 0 : i32
    %c0_i32_0 = arith.constant 0 : i32
    %c0_i32_1 = arith.constant 0 : i32
    return %c0_i32, %c0_i32_0 : i32, i32
  }
  func.func @transform_4(%arg0: i32) -> (i32, i32) {
    %c0_i32 = arith.constant 0 : i32
    %c0_i32_0 = arith.constant 0 : i32
    %c0_i32_1 = arith.constant 0 : i32
    return %c0_i32, %c0_i32_0 : i32, i32
  }
  func.func @transform_5(%arg0: i32) -> (i32, i32) {
    %c0_i32 = arith.constant 0 : i32
    %c0_i32_0 = arith.constant 0 : i32
    %c0_i32_1 = arith.constant 0 : i32
    return %c0_i32, %c0_i32_0 : i32, i32
  }
  func.func @transform_6(%arg0: i32) -> (i32, i32) {
    %c0_i32 = arith.constant 0 : i32
    %c0_i32_0 = arith.constant 0 : i32
    %c0_i32_1 = arith.constant 0 : i32
    return %c0_i32, %c0_i32_0 : i32, i32
  }
  func.func @transform_7(%arg0: i32) -> (i32, i32) {
    %c0_i32 = arith.constant 0 : i32
    %c0_i32_0 = arith.constant 0 : i32
    %c0_i32_1 = arith.constant 0 : i32
    return %c0_i32, %c0_i32_0 : i32, i32
  }
  func.func @transform_8(%arg0: i32) -> (i32, i32) {
    %c0_i32 = arith.constant 0 : i32
    %c0_i32_0 = arith.constant 0 : i32
    %c0_i32_1 = arith.constant 0 : i32
    return %c0_i32, %c0_i32_0 : i32, i32
  }
  func.func @transform_9(%arg0: i32) -> (i32, i32) {
    %c0_i32 = arith.constant 0 : i32
    %c0_i32_0 = arith.constant 0 : i32
    %c0_i32_1 = arith.constant 0 : i32
    return %c0_i32, %c0_i32_0 : i32, i32
  }
  func.func @transform_10(%arg0: i32) -> (i32, i32) {
    %c0_i32 = arith.constant 0 : i32
    %c0_i32_0 = arith.constant 0 : i32
    %c0_i32_1 = arith.constant 0 : i32
    return %c0_i32, %c0_i32_0 : i32, i32
  }
  func.func @transform_11(%arg0: i32) -> (i32, i32) {
    %c0_i32 = arith.constant 0 : i32
    %c0_i32_0 = arith.constant 0 : i32
    %c0_i32_1 = arith.constant 0 : i32
    return %c0_i32, %c0_i32_0 : i32, i32
  }
  func.func @transform_12(%arg0: i32) -> (i32, i32) {
    %c0_i32 = arith.constant 0 : i32
    %c0_i32_0 = arith.constant 0 : i32
    %c0_i32_1 = arith.constant 0 : i32
    return %c0_i32, %c0_i32_0 : i32, i32
  }
  func.func @transform_13(%arg0: i32) -> (i32, i32, i32) {
    %c0_i32 = arith.constant 0 : i32
    %c0_i32_0 = arith.constant 0 : i32
    %c0_i32_1 = arith.constant 0 : i32
    return %arg0, %c0_i32, %c0_i32_0 : i32, i32, i32
  }
}

</mosaic_0001>

<bundles_post_ra>
// kernel: neg.1
= control target key start
LH: loop header
LB: loop body
LE: loop exit
PB: predicated region body
PF: predicated region fallthrough
CT: control target
= control target key end

     0   :  { %s24_s0 = inlined_call_operand.vmem [shape: f32[8,4], index: 0, kind: input, shape index: {}]   ;;  %s25_s1 = inlined_call_operand.vmem [shape: f32[8,4], index: 1, kind: output, shape index: {}]  }
   0x1   :  { %v2_v0 = vld [vmem:[%s24_s0] sm:$0xff] }
   0x2   :  { %v5_v1 = vxor.u32 2147483648, %v2_v0 }
   0x4   :  { %7 = vst [vmem:[%s25_s1] sm:$0xff] %v5_v1 }

// kernel: causal_self_attention.1
= control target key start
LH: loop header
LB: loop body
LE: loop exit
PB: predicated region body
PF: predicated region fallthrough
CT: control target
= control target key end

     0   :  { %s2320_s0 = inlined_call_operand.vmem [shape: f32[2,8,32], index: 0, kind: input, shape index: {}]   ;;  %s2321_s1 = inlined_call_operand.vmem [shape: bf16[32,12], index: 1, kind: input, shape index: {}]   ;;  %s2322_s2 = inlined_call_operand.vmem [shape: bf16[12,96], index: 2, kind: input, shape index: {}]   ;;  %s2323_s3 = inlined_call_operand.vmem [shape: f32[1,96], index: 3, kind: input, shape index: {}]   ;;  %s2324_s4 = inlined_call_operand.vmem [shape: bf16[32,32], index: 4, kind: input, shape index: {}]   ;;  %s2325_s5 = inlined_call_operand.vmem [shape: bf16[32,32], index: 5, kind: input, shape index: {}]   ;;  %s2326_s6 = inlined_call_operand.vmem [shape: bf16[32,32], index: 6, kind: input, shape index: {}]   ;;  %s2327_s7 = inlined_call_operand.vmem [shape: bf16[32,32], index: 7, kind: input, shape index: {}]   ;;  %s2328_s8 = inlined_call_operand.vmem [shape: f32[1,32], index: 8, kind: input, shape index: {}]   ;;  %s2329_s9 = inlined_call_operand.vmem [shape: f32[8,8], index: 9, kind: input, shape index: {}]   ;;  %s2330_s10 = inlined_call_operand.vmem [shape: f32[8,8], index: 10, kind: input, shape index: {}]   ;;  %s2331_s11 = inlined_call_operand.vmem [shape: f32[8,8], index: 11, kind: input, shape index: {}]   ;;  %s2332_s12 = inlined_call_operand.vmem [shape: f32[8,8], index: 12, kind: input, shape index: {}]   ;;  %s2333_s13 = inlined_call_operand.hbm [shape: f32[2,8,32], index: 13, kind: output, shape index: {}]  }
   0x1   :  { %2337 = sst [smem:[#allocation6_spill]] %s2320_s0 }
   0x2   :  { %2338 = sst [smem:[#allocation7_spill]] %s2321_s1 }
   0x3   :  { %18 = vsyncpa [#allocation4], 0 }
   0x4   :  { %20 = vsyncpa [#allocation4 + $0x1], 0  ;;  %s1953_s25 = smov 0   ;;  %s1955_s26 = smov 0  }
   0x5   :  { %s1957_s27 = smov 0   ;;  %s1959_s28 = smov 0  }
   0x6 LB: > { %s1974_s29 = sadd.s32 4294967295, %s1866_s28   ;;  %s1552_s30 = sadd.s32 4294967294, %s1866_s28   ;;  %s1866_s28 = sphi %s1959_s28, %s2348_s28   ;;  %s1862_s27 = sphi %s1957_s27, %s2347_s27   ;;  %s1858_s26 = sphi %s1955_s26, %s2346_s26   ;;  %s1854_s25 = sphi %s1953_s25, %s2345_s25  }
   0x7   : > { %s1978_s14 = sadd.s32 1, %s1866_s28   ;;  %s311_s15 = sadd.s32 1, %s1862_s27 }
   0x8   : > { %s308_s16 = ssub.s32 %s1866_s28, %s1978_s14  ;;  %p321_p0 = scmp.ne.s32.totalorder %s1862_s27, %s1858_s26 }
   0x9   : > { %p309_p1 = scmp.eq.s32.totalorder %s308_s16, 0  ;;  %p322_p2 = scmp.eq.s32.totalorder %s1974_s29, 1 }
   0xa   : > { %p327_p3 = scmp.ne.s32.totalorder %s1858_s26, %s1854_s25  ;;  %p328_p4 = scmp.eq.s32.totalorder %s1552_s30, 1 }
   0xb   : > { %s1989_s17 = scalar_select %p309_p1, %s1862_s27, %s311_s15  }
   0xc   : > { %p1991_p5 = por %p322_p2, %p321_p0  ;;  %p1995_p6 = por %p328_p4, %p327_p3 }
   0xd   : > { %p1555_p7 = scmp.ge.s32.totalorder %s1866_s28, 1  ;;  %p389_p8 = scmp.lt.s32.totalorder %s1866_s28, 3 }
   0xf   : > { %p390_p9 = pnand %p1555_p7, %p389_p8 }
  0x10   : > { %s2341_s1 = sld [smem:[#allocation7_spill]] (!%p390_p9)  ;;  %v1868_v1 = vmov (!%p390_p9), 0.0   ;;  %vm1869_vm0 = vmmov (!%p390_p9), 0   ;;  %p432_p10 = scmp.lt.s32.totalorder (!%p390_p9), %s1974_s29, 1  ;;  %vm463_vm1 = vcmask (!%p390_p9), 261120   ;;  %vm521_vm2 = vcmask (!%p390_p9), 1045504  }
  0x11   : > { %393 = sbr.rel (%p390_p9) target bundleno = 2350 (0x92e), region = 72  ;;  %1628 = vmatprep.subr.bf16.mxu0 (!%p390_p9), %v1868_v1  ;;  %1636 = vmatprep.subr.bf16.mxu1 (!%p390_p9), %v1868_v1  ;;  %s2342_s0 = sld [smem:[#allocation6_spill]] (!%p390_p9)  ;;  %v1777_v5 = vld [vmem:[%s2322_s2] sm:$0x3f] (!%p390_p9)   ;;  %vm517_vm3 = vcmask (!%p390_p9), 97280   ;;  %v1779_v14 = vld [vmem:[%s2324_s4 + $0x8] sm:$0xff] (!%p390_p9)   ;;  %v438_v16 = vlaneseq (!%p390_p9) }
  0x12   : > { %1632 = vmatprep.mubr.msk.bf16.mxu0 (!%p390_p9), %vm1869_vm0, %v1868_v1  ;;  %1638 = vmatprep.mubr.msk.bf16.mxu1 (!%p390_p9), %vm1869_vm0, %v1868_v1  ;;  %v523_v6 = vsel (!%p390_p9), %vm521_vm2, %v1777_v5, 0  ;;  %v1778_v13 = vld [vmem:[%s2324_s4] sm:$0xff] (!%p390_p9)   ;;  %v1781_v18 = vld [vmem:[%s2325_s5 + $0x8] sm:$0xff] (!%p390_p9)   ;;  %s1871_s15 = smov (!%p390_p9), 120   ;;  %s1872_s16 = smov (!%p390_p9), 112   ;;  %vm774_vm5 = vcmask (!%p390_p9), 1047616  }
  0x13   : > { %1637 = vmatpush3.bf16.msra.mxu1 (!%p390_p9), %v523_v6  ;;  %v1780_v15 = vld [vmem:[%s2325_s5] sm:$0xff] (!%p390_p9)   ;;  %v2046_v17 = vshrl.u32 (!%p390_p9), %v438_v16, 7  ;;  %s1874_s21 = smov (!%p390_p9), 8   ;;  %s1877_s23 = smov (!%p390_p9), 12   ;;  %vm810_vm6 = vcmask (!%p390_p9), 64512   ;;  %vm871_vm8 = vcmask (!%p390_p9), 1043456  }
  0x14   : > { %1642 = vmatprep.subr.bf16.mxu1 (!%p390_p9), %v1868_v1  ;;  %v1563_v21 = vld [vmem:[%s2323_s3] ss:$0 sm:$0xff] (!%p390_p9)  ;;  %s1880_s22 = smov (!%p390_p9), 124   ;;  %vm918_vm9 = vcmask (!%p390_p9), 60416   ;;  %vm1085_vm10 = vcmask (!%p390_p9), 126016   ;;  %vm1247_vm11 = vcmask (!%p390_p9), 191616  }
  0x15   : > { %vm440_vm4 = vcmp.eq.s32.totalorder (!%p390_p9), %v2046_v17, 0  ;;  %v769_v49 = vld [vmem:[%s2332_s12] sm:$0xff] (!%p390_p9)  ;;  %vm1409_vm12 = vcmask (!%p390_p9), 257216  }
  0x16   : > { %v1775_v0 = vld [vmem:[%s2341_s1] sm:$0xff] (!%p390_p9)   ;;  %v1776_v2 = vld [vmem:[%s2341_s1 + $0x8] sm:$0xff] (!%p390_p9)  }
  0x17   : > { %1629 = vmatpush3.bf16.msra.mxu0 (!%p390_p9), %v1775_v0  ;;  %v767_v57 = vld [vmem:[%s2330_s10] sm:$0xff] (!%p390_p9) }
  0x18   : > { %1630 = vmatprep.subr.bf16.mxu0 %v1868_v1  ;;  %s433_s24 = scalar_select %p432_p10, %s1974_s29, 1  ;;  %v2137_v5 = vld [vmem:[%s2331_s11] sm:$0xff] }
  0x19   : > { %v2144_v6 = vld [vmem:[%s2329_s9] sm:$0xff] }
  0x1a   : > { %s1557_s30 = sshll.u32 %s433_s24, 3  ;;  %s1875_s24 = smov 4  }
  0x1b   : > { %1631 = vmatpush3.bf16.msra.mxu0 %v1776_v2  ;;  %s435_s20 = scalar_lea.vmem %s2342_s0, %s1557_s30  ;;  %s1870_s30 = smov 96  }
  0x1c   : > { %1650 = vmatprep.subr.bf16.mxu0 %v1868_v1  ;;  %v2020_v3 = vld [vmem:[%s435_s20] sm:$0xff]  ;;  %s2334_s20 = smov 104  }
  0x1d   : > { %v446_v4 = vpack.c.bf16 %v2020_v3, %v2020_v3  ;;  %v441_v19 = vrot.slane %v2020_v3, 7 }
  0x1f   : > { %1633 = vmatmul.mubr.msk.bf16.vlgmr.msra.gmra.mrb[0].mxu0 %vm463_vm1, %v446_v4  ;;  %v444_v20 = vsel %vm440_vm4, 0.0, %v441_v19 }
  0x20   : > { %1654 = vmatprep.mubr.msk.bf16.mxu0 %vm1869_vm0, %v1868_v1  ;;  %1651 = vmatpush3.bf16.msra.mxu0 %v1780_v15  ;;  %v2058_v22 = vsub.f32 %v444_v20, %v2020_v3 }
  0x21   : > { %1652 = vmatprep.subr.bf16.mxu0 %v1868_v1 }
  0x24   : > { %1653 = vmatpush3.bf16.msra.mxu0 %v1781_v18 }
  0x25   : > { %1666 = vmatprep.subr.bf16.mxu0 %v1868_v1 }
  0xf2   : > { %v501_v7 = vpop.f32.mrb[0].mxu0 }
  0xf3   : > { %1786 = vtanh.f32 %v501_v7  ;;  %v1634_v8 = vpop.f32.mrb[1].mxu0 }
  0xf4   : > { %v504_v9 = vpop.f32.mrb[2].mxu0 }
  0xf5   : > { %v1635_v10 = vpop.f32.mrb[3].mxu0 }
  0xfd   : > { %v1787_v11 = vpop.eup %1786 }
  0xfe   : > { %v509_v12 = vpack.c.bf16 %v1787_v11, %v1787_v11 }
 0x100   : > { %1639 = vmatmul.mubr.msk.bf16.vlgmr.msra.gmra.mrb[0].mxu1 %vm517_vm3, %v509_v12 }
 0x101   : > { %1646 = vmatprep.mubr.msk.bf16.mxu1 %vm1869_vm0, %v1868_v1  ;;  %1643 = vmatpush3.bf16.msra.mxu1 %v1778_v13 }
 0x102   : > { %1644 = vmatprep.subr.bf16.mxu1 %v1868_v1 }
 0x105   : > { %1645 = vmatpush3.bf16.msra.mxu1 %v1779_v14 }
 0x106   : > { %1658 = vmatprep.subr.bf16.mxu1 %v1868_v1 }
 0x1d3   : > { %v559_v23 = vpop.f32.mrb[0].mxu1 }
 0x1d4   : > { %v2060_v24 = vadd.f32 %v1563_v21, %v559_v23  ;;  %v1640_v25 = vpop.f32.mrb[1].mxu1 }
 0x1d5   : > { %v562_v26 = vpop.f32.mrb[2].mxu1 }
 0x1d6   : > { %v572_v27 = vmul.f32 %v2060_v24, %v2058_v22  ;;  %576 = vrot.lane.b32.xlu0 %v2060_v24, %s1870_s30  ;;  %v1641_v28 = vpop.f32.mrb[3].mxu1  ;;  %s2336_s30 = smov 24  }
 0x1d8   : > { %v573_v29 = vadd.f32 %v572_v27, %v2020_v3 }
 0x1da   : > { %v574_v30 = vpack.c.bf16 %v573_v29, %v573_v29 }
 0x1dc   : > { %1647 = vmatmul.mubr.msk.bf16.vlgmr.msra.gmra.mrb[4].mxu1 %vm463_vm1, %v574_v30 }
 0x1dd   : > { %1662 = vmatprep.mubr.msk.bf16.mxu1 %vm1869_vm0, %v1868_v1 }
 0x248   : > { %v577_v31 = vpop.permute.xlu0 %576 }
 0x249   : > { %v579_v32 = vmul.f32 %v577_v31, %v2058_v22 }
 0x24b   : > { %v580_v33 = vadd.f32 %v579_v32, %v2020_v3 }
 0x24d   : > { %v581_v34 = vpack.c.bf16 %v580_v33, %v580_v33 }
 0x24f   : > { %1655 = vmatmul.mubr.msk.bf16.vlgmr.msra.gmra.mrb[4].mxu0 %vm463_vm1, %v581_v34 }
 0x250   : > { %1668 = vmatprep.mubr.msk.bf16.mxu0 %vm1869_vm0, %v1868_v1 }
 0x2af   : > { %v2074_v35 = vpop.f32.mrb[4].mxu1 }
 0x2b0   : > { %926 = vrot.lane.b32.xlu1 %v2074_v35, %s1871_s15  ;;  %v1648_v36 = vpop.f32.mrb[5].mxu1 }
 0x2b1   : > { %v644_v37 = vpop.f32.mrb[6].mxu1 }
 0x2b2   : > { %v1649_v38 = vpop.f32.mrb[7].mxu1 }
 0x322   : > { %v2078_v39 = vpop.f32.mrb[4].mxu0  ;;  %v927_v43 = vpop.permute.xlu1 %926 }
 0x323   : > { %948 = vrot.lane.b32.xlu0 %v2078_v39, %s1871_s15  ;;  %v1656_v40 = vpop.f32.mrb[5].mxu0  ;;  %1111 = vrot.lane.b32.xlu1 %v2078_v39, %s1872_s16 }
 0x324   : > { %v703_v41 = vpop.f32.mrb[6].mxu0 }
 0x325   : > { %v1657_v42 = vpop.f32.mrb[7].mxu0 }
 0x327   : > { %1091 = vrot.lane.b32.xlu0 %v2074_v35, %s1872_s16  ;;  %1273 = vrot.lane.b32.xlu1 %v2078_v39, %s2334_s20 }
 0x32b   : > { %1253 = vrot.lane.b32.xlu0 %v2074_v35, %s2334_s20  ;;  %s1876_s20 = smov 16  }
 0x32f   : > { %929 = vrot.lane.b32.xlu0 %v927_v43, %s1874_s21 }
 0x395   : > { %v949_v44 = vpop.permute.xlu0 %948  ;;  %v1112_v45 = vpop.permute.xlu1 %1111 }
 0x396   : > { %951 = vrot.lane.b32.xlu1 %v949_v44, %s1874_s21 }
 0x399   : > { %v2092_v46 = vpop.permute.xlu0 %1091  ;;  %v1274_v47 = vpop.permute.xlu1 %1273 }
 0x39a   : > { %1094 = vrot.lane.b32.xlu0 %v2092_v46, %s1874_s21  ;;  %1114 = vrot.lane.b32.xlu1 %v1112_v45, %s1874_s21 }
 0x39d   : > { %v2097_v48 = vpop.permute.xlu0 %1253 }
 0x39e   : > { %1256 = vrot.lane.b32.xlu0 %v2097_v48, %s1874_s21  ;;  %1276 = vrot.lane.b32.xlu1 %v1274_v47, %s1874_s21 }
 0x3a1   : > { %v930_v50 = vpop.permute.xlu0 %929 }
 0x3a2   : > { %775 = vrot.lane.b32.xlu0 %v2074_v35, %s1874_s21  ;;  %793 = vrot.lane.b32.xlu1 %v2078_v39, %s1874_s21  ;;  %v931_v55 = vsel %vm774_vm5, %v930_v50, %v927_v43 }
 0x3a6   : > { %800 = vrot.lane.b32.xlu0 %v769_v49, %s1875_s24 }
 0x408   : > { %v952_v51 = vpop.permute.xlu1 %951 }
 0x409   : > { %v953_v52 = vsel %vm774_vm5, %v952_v51, %v949_v44 }
 0x40a   : > { %954 = vrot.lane.b32.xlu1 %v953_v52, %s1874_s21  ;;  %v1782_v52 = vld [vmem:[%s2326_s6] sm:$0xff]  }
 0x40b   : > { %1659 = vmatpush3.bf16.msra.mxu1 %v1782_v52 }
 0x40c   : > { %v1095_v53 = vpop.permute.xlu0 %1094  ;;  %v1115_v54 = vpop.permute.xlu1 %1114  ;;  %1660 = vmatprep.subr.bf16.mxu1 %v1868_v1 }
 0x40d   : > { %v1116_v56 = vsel %vm774_vm5, %v1115_v54, %v1112_v45  ;;  %v1096_v60 = vsel %vm774_vm5, %v1095_v53, %v2092_v46 }
 0x40e   : > { %932 = vrot.lane.b32.xlu1 %v931_v55, %s1874_s21  ;;  %1117 = vrot.lane.b32.xlu0 %v1116_v56, %s1874_s21 }
 0x410   : > { %v1257_v58 = vpop.permute.xlu0 %1256  ;;  %v1277_v59 = vpop.permute.xlu1 %1276 }
 0x411   : > { %v1258_v61 = vsel %vm774_vm5, %v1257_v58, %v2097_v48  ;;  %v1278_v62 = vsel %vm774_vm5, %v1277_v59, %v1274_v47 }
 0x412   : > { %782 = vrot.lane.b32.xlu1 %v767_v57, %s1875_s24  ;;  %1097 = vrot.lane.b32.xlu0 %v1096_v60, %s1874_s21  ;;  %v1783_v57 = vld [vmem:[%s2326_s6 + $0x8] sm:$0xff]  }
 0x413   : > { %1661 = vmatpush3.bf16.msra.mxu1 %v1783_v57 }
 0x414   : > { %v776_v63 = vpop.permute.xlu0 %775  ;;  %v794_v0 = vpop.permute.xlu1 %793  ;;  %1672 = vmatprep.subr.bf16.mxu1 %v1868_v1 }
 0x415   : > { %v777_v2 = vsel %vm774_vm5, %v776_v63, %v2074_v35  ;;  %v795_v4 = vsel %vm774_vm5, %v794_v0, %v2078_v39 }
 0x416   : > { %1259 = vrot.lane.b32.xlu0 %v1258_v61, %s1874_s21  ;;  %1279 = vrot.lane.b32.xlu1 %v1278_v62, %s1874_s21 }
 0x418   : > { %v801_v7 = vpop.permute.xlu0 %800 }
 0x41a   : > { %778 = vrot.lane.b32.xlu0 %v777_v2, %s1874_s21  ;;  %796 = vrot.lane.b32.xlu1 %v795_v4, %s1874_s21 }
 0x41e   : > { %943 = vrot.lane.b32.xlu1 %v2137_v5, %s1874_s21 }
 0x422   : > { %921 = vrot.lane.b32.xlu1 %v2144_v6, %s1874_s21 }
 0x47c   : > { %v955_v8 = vpop.permute.xlu1 %954 }
 0x47d   : > { %v956_v9 = vsel %vm774_vm5, %v955_v8, %v949_v44 }
 0x47e   : > { %v957_v10 = vmul.f32 %v956_v9, %v801_v7 }
 0x480   : > { %v1118_v11 = vpop.permute.xlu0 %1117  ;;  %959 = vrot.lane.b32.xlu0 %v957_v10, %s1875_s24  ;;  %v933_v12 = vpop.permute.xlu1 %932  ;;  %v792_v10 = vmul.f32 %v2137_v5, %v2078_v39 }
 0x481   : > { %v1119_v13 = vsel %vm774_vm5, %v1118_v11, %v1112_v45  ;;  %v934_v14 = vsel %vm774_vm5, %v933_v12, %v927_v43 }
 0x482   : > { %v1120_v20 = vmul.f32 %v1119_v13, %v801_v7 }
 0x484   : > { %v1098_v15 = vpop.permute.xlu0 %1097  ;;  %1107 = vrot.lane.b32.xlu0 %v2137_v5, %s1876_s20  ;;  %v783_v18 = vpop.permute.xlu1 %782 }
 0x485   : > { %v935_v19 = vmul.f32 %v934_v14, %v783_v18  ;;  %v1099_v23 = vsel %vm774_vm5, %v1098_v15, %v2092_v46 }
 0x486   : > { %v1100_v27 = vmul.f32 %v1099_v23, %v783_v18 }
 0x487   : > { %937 = vrot.lane.b32.xlu1 %v935_v19, %s1875_s24  ;;  %s1879_s24 = smov 20   ;;  %v773_v19 = vmul.f32 %v2144_v6, %v2074_v35 }
 0x488   : > { %1122 = vrot.lane.b32.xlu0 %v1120_v20, %s1877_s23  ;;  %v1280_v21 = vpop.permute.xlu1 %1279  ;;  %v1260_v25 = vpop.permute.xlu0 %1259 }
 0x489   : > { %v1281_v26 = vsel %vm774_vm5, %v1280_v21, %v1274_v47  ;;  %v1261_v29 = vsel %vm774_vm5, %v1260_v25, %v2097_v48 }
 0x48a   : > { %v1282_v28 = vmul.f32 %v1281_v26, %v801_v7  ;;  %v1262_v32 = vmul.f32 %v1261_v29, %v783_v18 }
 0x48b   : > { %1087 = vrot.lane.b32.xlu1 %v2144_v6, %s1876_s20 }
 0x48c   : > { %1269 = vrot.lane.b32.xlu0 %v2137_v5, %s2336_s30  ;;  %v797_v30 = vpop.permute.xlu1 %796  ;;  %v779_v31 = vpop.permute.xlu0 %778 }
 0x48d   : > { %v798_v33 = vsel %vm774_vm5, %v797_v30, %v2078_v39  ;;  %v780_v34 = vsel %vm774_vm5, %v779_v31, %v2074_v35 }
 0x48e   : > { %v803_v36 = vmul.f32 %v801_v7, %v798_v33  ;;  %v785_v37 = vmul.f32 %v783_v18, %v780_v34 }
 0x48f   : > { %1102 = vrot.lane.b32.xlu1 %v1100_v27, %s1877_s23  ;;  %s1881_s23 = smov 64  }
 0x490   : > { %1284 = vrot.lane.b32.xlu0 %v1282_v28, %s1879_s24  ;;  %v944_v38 = vpop.permute.xlu1 %943 }
 0x491   : > { %v946_v40 = vmul.f32 %v944_v38, %v2078_v39 }
 0x493   : > { %1249 = vrot.lane.b32.xlu1 %v2144_v6, %s2336_s30  ;;  %s2343_s30 = smov 104  }
 0x494   : > { %1264 = vrot.lane.b32.xlu0 %v1262_v32, %s1879_s24  ;;  %v922_v43 = vpop.permute.xlu1 %921  ;;  %v771_v32 = vand.u32 127, %v438_v16 }
 0x495   : > { %v924_v46 = vmul.f32 %v922_v43, %v2074_v35 }
 0x496   : > { %vm772_vm7 = vcmp.ge.s32.totalorder %v2046_v17, %v771_v32 }
 0x497   : > { %805 = vrot.lane.b32.xlu1 %v803_v36, %s1880_s22 }
 0x498   : > { %787 = vrot.lane.b32.xlu0 %v785_v37, %s1880_s22 }
 0x4f2   : > { %v960_v41 = vpop.permute.xlu0 %959 }
 0x4f3   : > { %v962_v42 = vadd.f32 %v960_v41, %v946_v40 }
 0x4f5   : > { %v963_v44 = vpack.c.bf16 %v962_v42, %v962_v42 }
 0x4f6   : > { %v1108_v45 = vpop.permute.xlu0 %1107 }
 0x4f7   : > { %968 = vrot.lane.b32.xlu1 %v963_v44, %s1871_s15  ;;  %v1110_v47 = vmul.f32 %v1108_v45, %v2078_v39 }
 0x4f9   : > { %v938_v48 = vpop.permute.xlu1 %937 }
 0x4fa   : > { %v940_v49 = vadd.f32 %v938_v48, %v924_v46  ;;  %v1123_v50 = vpop.permute.xlu0 %1122 }
 0x4fb   : > { %v1125_v51 = vadd.f32 %v1123_v50, %v1110_v47 }
 0x4fc   : > { %v941_v53 = vpack.c.bf16 %v940_v49, %v940_v49 }
 0x4fd   : > { %v1126_v54 = vpack.c.bf16 %v1125_v51, %v1125_v51  ;;  %v1088_v55 = vpop.permute.xlu1 %1087 }
 0x4fe   : > { %v1270_v56 = vpop.permute.xlu0 %1269  ;;  %965 = vrot.lane.b32.xlu0 %v941_v53, %s1871_s15  ;;  %v1090_v58 = vmul.f32 %v1088_v55, %v2074_v35 }
 0x4ff   : > { %1131 = vrot.lane.b32.xlu1 %v1126_v54, %s1872_s16  ;;  %v1272_v59 = vmul.f32 %v1270_v56, %v2078_v39 }
 0x501   : > { %v1103_v60 = vpop.permute.xlu1 %1102 }
 0x502   : > { %v1105_v61 = vadd.f32 %v1103_v60, %v1090_v58  ;;  %v1285_v62 = vpop.permute.xlu0 %1284 }
 0x503   : > { %v1287_v63 = vadd.f32 %v1285_v62, %v1272_v59 }
 0x504   : > { %v1106_v0 = vpack.c.bf16 %v1105_v61, %v1105_v61 }
 0x505   : > { %v1288_v2 = vpack.c.bf16 %v1287_v63, %v1287_v63  ;;  %v1250_v4 = vpop.permute.xlu1 %1249 }
 0x506   : > { %v1252_v7 = vmul.f32 %v1250_v4, %v2074_v35  ;;  %v1265_v8 = vpop.permute.xlu0 %1264  ;;  %1128 = vrot.lane.b32.xlu0 %v1106_v0, %s1872_s16 }
 0x507   : > { %1293 = vrot.lane.b32.xlu1 %v1288_v2, %s2343_s30 }
 0x508   : > { %v1267_v9 = vadd.f32 %v1265_v8, %v1252_v7 }
 0x509   : > { %v806_v11 = vpop.permute.xlu1 %805 }
 0x50a   : > { %v1268_v12 = vpack.c.bf16 %v1267_v9, %v1267_v9  ;;  %v808_v13 = vadd.f32 %v806_v11, %v792_v10  ;;  %v788_v15 = vpop.permute.xlu0 %787 }
 0x50b   : > { %582 = vrot.lane.b32.xlu1 %v2060_v24, %s1881_s23  ;;  %v790_v20 = vadd.f32 %v788_v15, %v773_v19  ;;  %s1882_s23 = smov [#allocation3]  }
 0x50c   : > { %v809_v14 = vpack.c.bf16 %v808_v13, %v808_v13  ;;  %1290 = vrot.lane.b32.xlu0 %v1268_v12, %s2343_s30 }
 0x50d   : > { %v791_v39 = vpack.c.bf16 %v790_v20, %v790_v20 }
 0x50e   : > { %v815_v18 = vsel %vm810_vm6, %v809_v14, 0 }
 0x50f   : > { %1667 = vmatpush3.bf16.xpose.msra.mxu0 %v815_v18 }
 0x510   : > { %1678 = vmatprep.subr.bf16.mxu0 %v1868_v1 }
 0x516   : > { %1669 = vmatmul.mubr.msk.bf16.vlgmr.msra.gmra.mrb[8].mxu0 %vm810_vm6, %v791_v39 }
 0x517   : > { %1680 = vmatprep.mubr.msk.bf16.mxu0 %vm1869_vm0, %v1868_v1 }
 0x569   : > { %v969_v24 = vpop.permute.xlu1 %968 }
 0x56a   : > { %v974_v5 = vsel %vm810_vm6, %v969_v24, 0 }
 0x56b   : > { %1679 = vmatpush3.bf16.xpose.msra.mxu0 %v974_v5 }
 0x56c   : > { %1690 = vmatprep.subr.bf16.mxu0 %v1868_v1 }
 0x570   : > { %v966_v21 = vpop.permute.xlu0 %965 }
 0x571   : > { %v1132_v23 = vpop.permute.xlu1 %1131 }
 0x572   : > { %v1137_v35 = vsel %vm810_vm6, %v1132_v23, 0  ;;  %1681 = vmatmul.mubr.msk.bf16.vlgmr.msra.gmra.mrb[12].mxu0 %vm810_vm6, %v966_v21 }
 0x573   : > { %1691 = vmatpush3.bf16.xpose.msra.mxu0 %v1137_v35  ;;  %1692 = vmatprep.mubr.msk.bf16.mxu0 %vm1869_vm0, %v1868_v1 }
 0x574   : > { %1702 = vmatprep.subr.bf16.mxu0 %v1868_v1 }
 0x578   : > { %v1129_v6 = vpop.permute.xlu0 %1128 }
 0x579   : > { %v1294_v25 = vpop.permute.xlu1 %1293 }
 0x57a   : > { %v1299_v26 = vsel %vm810_vm6, %v1294_v25, 0  ;;  %1693 = vmatmul.mubr.msk.bf16.vlgmr.msra.gmra.mrb[16].mxu0 %vm810_vm6, %v1129_v6 }
 0x57b   : > { %1703 = vmatpush3.bf16.xpose.msra.mxu0 %v1299_v26  ;;  %1704 = vmatprep.mubr.msk.bf16.mxu0 %vm1869_vm0, %v1868_v1 }
 0x57c   : > { %1714 = vmatprep.subr.bf16.mxu0 %v1868_v1 }
 0x57d   : > { %v583_v27 = vpop.permute.xlu1 %582 }
 0x57e   : > { %v585_v28 = vmul.f32 %v583_v27, %v2058_v22  ;;  %v1291_v30 = vpop.permute.xlu0 %1290 }
 0x580   : > { %v586_v29 = vadd.f32 %v585_v28, %v2020_v3 }
 0x582   : > { %v587_v31 = vpack.c.bf16 %v586_v29, %v586_v29  ;;  %1705 = vmatmul.mubr.msk.bf16.vlgmr.msra.gmra.mrb[20].mxu0 %vm810_vm6, %v1291_v30 }
 0x583   : > { %1718 = vmatprep.mubr.msk.bf16.mxu0 %vm1869_vm0, %v1868_v1 }
 0x584   : > { %1663 = vmatmul.mubr.msk.bf16.vlgmr.msra.gmra.mrb[8].mxu1 %vm463_vm1, %v587_v31 }
 0x585   : > { %1674 = vmatprep.mubr.msk.bf16.mxu1 %vm1869_vm0, %v1868_v1 }
 0x5e9   : > { %v851_v33 = vpop.f32.mrb[8].mxu0 }
 0x5ea   : > { %v857_v3 = vsel %vm772_vm7, %v851_v33, -1e+30  ;;  %v1670_v22 = vpop.f32.mrb[9].mxu0 }
 0x5eb   : > { %v854_v34 = vpop.f32.mrb[10].mxu0  ;;  %v858_v36 = vsel %vm810_vm6, %v857_v3, -inf }
 0x5ec   : > { %859 = vmax.xlane.f32.xlu0 %v858_v36  ;;  %v1671_v37 = vpop.f32.mrb[11].mxu0 }
 0x645   : > { %v1010_v38 = vpop.f32.mrb[12].mxu0 }
 0x646   : > { %v1016_v40 = vsel %vm772_vm7, %v1010_v38, -1e+30  ;;  %v1682_v41 = vpop.f32.mrb[13].mxu0 }
 0x647   : > { %v1013_v42 = vpop.f32.mrb[14].mxu0  ;;  %v1017_v16 = vsel %vm810_vm6, %v1016_v40, -inf }
 0x648   : > { %1018 = vmax.xlane.f32.xlu1 %v1017_v16  ;;  %v1683_v43 = vpop.f32.mrb[15].mxu0 }
 0x64d   : > { %v1173_v44 = vpop.f32.mrb[16].mxu0 }
 0x64e   : > { %v1179_v45 = vsel %vm772_vm7, %v1173_v44, -1e+30  ;;  %v1694_v46 = vpop.f32.mrb[17].mxu0 }
 0x64f   : > { %v1176_v47 = vpop.f32.mrb[18].mxu0  ;;  %v1180_v48 = vsel %vm810_vm6, %v1179_v45, -inf }
 0x650   : > { %1181 = vmax.xlane.f32.xlu0 %v1180_v48  ;;  %v1695_v49 = vpop.f32.mrb[19].mxu0 }
 0x651   : > { %v1784_v49 = vld [vmem:[%s2327_s7] sm:$0xff]  }
 0x652   : > { %1715 = vmatpush3.bf16.msra.mxu0 %v1784_v49 }
 0x653   : > { %1716 = vmatprep.subr.bf16.mxu0 %v1868_v1 }
 0x655   : > { %v1335_v50 = vpop.f32.mrb[20].mxu0 }
 0x656   : > { %v1341_v51 = vsel %vm772_vm7, %v1335_v50, -1e+30  ;;  %v1706_v52 = vpop.f32.mrb[21].mxu0 }
 0x657   : > { %v759_v53 = vpop.f32.mrb[8].mxu1  ;;  %v1338_v54 = vpop.f32.mrb[22].mxu0  ;;  %v1342_v55 = vsel %vm810_vm6, %v1341_v51, -inf }
 0x658   : > { %v765_v56 = vpack.c.bf16 %v759_v53, %v759_v53  ;;  %1343 = vmax.xlane.f32.xlu0 %v1342_v55  ;;  %v1664_v57 = vpop.f32.mrb[9].mxu1  ;;  %v1707_v58 = vpop.f32.mrb[23].mxu0  ;;  %v1785_v53 = vld [vmem:[%s2327_s7 + $0x8] sm:$0xff]  }
 0x659   : > { %v762_v59 = vpop.f32.mrb[10].mxu1  ;;  %1717 = vmatpush3.bf16.msra.mxu0 %v1785_v53 }
 0x65a   : > { %1028 = vrot.lane.b32.xlu1 %v765_v56, %s1871_s15  ;;  %v1665_v60 = vpop.f32.mrb[11].mxu1  ;;  %v873_v61 = vsel %vm871_vm8, %v765_v56, 0  ;;  %s1808_s15 = sshll.u32 %s1882_s23, 4  ;;  %s1809_s15 = int_to_ptr.vmem [resolvable:$false] %s1808_s15 }
 0x65b   : > { %1673 = vmatpush3.bf16.msra.mxu1 %v873_v61  ;;  %s1810_s0 = scalar_lea.vmem %s1809_s15, 256 }
 0x65c   : > { %1684 = vmatprep.subr.bf16.mxu1 %v1868_v1 }
 0x65e   : > { %1352 = vrot.lane.b32.xlu1 %v765_v56, %s2343_s30 }
 0x66e   : > { %1190 = vrot.lane.b32.xlu0 %v765_v56, %s1872_s16  ;;  %s1589_s16 = sshll.u32 %s1974_s29, 7 }
 0x66f   : > { %s2277_s1 = scalar_lea.hbm %s2333_s13, %s1589_s16 }
 0x679   : > { %v860_v17 = vpop.xlane.xlu0 %859 }
 0x67a   : > { %v861_v62 = vsub.f32 %v857_v3, %v860_v17 }
 0x67c   : > { %v862_v63 = vmul.f32 1.442695, %v861_v62 }
 0x67e   : > { %1788 = vpow2.f32 %v862_v63 }
 0x688   : > { %v1789_v0 = vpop.eup %1788 }
 0x689   : > { %v867_v2 = vpack.c.bf16 %v1789_v0, %v1789_v0  ;;  %v864_v5 = vsel %vm810_vm6, %v1789_v0, 0.0 }
 0x68b   : > { %1675 = vmatmul.mubr.msk.bf16.vlgmr.msra.gmra.mrb[12].mxu1 %vm810_vm6, %v867_v2  ;;  %v1584_v2 = vld [vmem:[%s2328_s8] ss:$0 sm:$0xff] }
 0x68c   : > { %1686 = vmatprep.mubr.msk.bf16.mxu1 %vm1869_vm0, %v1868_v1 }
 0x6d5   : > { %v1019_v4 = vpop.xlane.xlu1 %1018 }
 0x6d6   : > { %v1020_v7 = vsub.f32 %v1016_v40, %v1019_v4 }
 0x6d8   : > { %v1021_v8 = vmul.f32 1.442695, %v1020_v7 }
 0x6d9   : > { %v1029_v9 = vpop.permute.xlu1 %1028 }
 0x6da   : > { %1790 = vpow2.f32 %v1021_v8  ;;  %v1034_v10 = vsel %vm871_vm8, %v1029_v9, 0 }
 0x6db   : > { %1685 = vmatpush3.bf16.msra.mxu1 %v1034_v10 }
 0x6dc   : > { %1696 = vmatprep.subr.bf16.mxu1 %v1868_v1 }
 0x6dd   : > { %v1182_v11 = vpop.xlane.xlu0 %1181  ;;  %v1353_v35 = vpop.permute.xlu1 %1352 }
 0x6de   : > { %v1183_v12 = vsub.f32 %v1179_v45, %v1182_v11  ;;  %v1358_v26 = vsel %vm871_vm8, %v1353_v35, 0 }
 0x6e0   : > { %v1184_v13 = vmul.f32 1.442695, %v1183_v12 }
 0x6e2   : > { %1792 = vpow2.f32 %v1184_v13 }
 0x6e4   : > { %v1791_v14 = vpop.eup %1790 }
 0x6e5   : > { %v1344_v15 = vpop.xlane.xlu0 %1343  ;;  %v1023_v18 = vsel %vm810_vm6, %v1791_v14, 0.0  ;;  %v1026_v19 = vpack.c.bf16 %v1791_v14, %v1791_v14 }
 0x6e6   : > { %v1345_v20 = vsub.f32 %v1341_v51, %v1344_v15  ;;  %1024 = vadd.xlane.f32.xlu1 %v1023_v18 }
 0x6e7   : > { %1687 = vmatmul.mubr.msk.bf16.vlgmr.msra.gmra.mrb[16].mxu1 %vm810_vm6, %v1026_v19 }
 0x6e8   : > { %v1346_v39 = vmul.f32 1.442695, %v1345_v20  ;;  %1698 = vmatprep.mubr.msk.bf16.mxu1 %vm1869_vm0, %v1868_v1 }
 0x6e9   : > { %v1191_v24 = vpop.permute.xlu0 %1190 }
 0x6ea   : > { %1794 = vpow2.f32 %v1346_v39  ;;  %v1196_v21 = vsel %vm871_vm8, %v1191_v24, 0  ;;  %865 = vadd.xlane.f32.xlu1 %v864_v5 }
 0x6eb   : > { %1697 = vmatpush3.bf16.msra.mxu1 %v1196_v21 }
 0x6ec   : > { %v1793_v23 = vpop.eup %1792  ;;  %1708 = vmatprep.subr.bf16.mxu1 %v1868_v1 }
 0x6ed   : > { %v1186_v6 = vsel %vm810_vm6, %v1793_v23, 0.0  ;;  %v1189_v25 = vpack.c.bf16 %v1793_v23, %v1793_v23 }
 0x6ee   : > { %1187 = vadd.xlane.f32.xlu0 %v1186_v6 }
 0x6ef   : > { %1699 = vmatmul.mubr.msk.bf16.vlgmr.msra.gmra.mrb[20].mxu1 %vm810_vm6, %v1189_v25 }
 0x6f0   : > { %1709 = vmatpush3.bf16.msra.mxu1 %v1358_v26  ;;  %1710 = vmatprep.mubr.msk.bf16.mxu1 %vm1869_vm0, %v1868_v1 }
 0x6f4   : > { %v1795_v27 = vpop.eup %1794 }
 0x6f5   : > { %v1348_v28 = vsel %vm810_vm6, %v1795_v27, 0.0  ;;  %v1351_v29 = vpack.c.bf16 %v1795_v27, %v1795_v27 }
 0x6f6   : > { %1349 = vadd.xlane.f32.xlu0 %v1348_v28 }
 0x6f7   : > { %1711 = vmatmul.mubr.msk.bf16.vlgmr.msra.gmra.mrb[24].mxu1 %vm810_vm6, %v1351_v29 }
 0x75e   : > { %v909_v30 = vpop.f32.mrb[12].mxu1 }
 0x75f   : > { %v1676_v31 = vpop.f32.mrb[13].mxu1 }
 0x760   : > { %v912_v32 = vpop.f32.mrb[14].mxu1 }
 0x761   : > { %v1677_v33 = vpop.f32.mrb[15].mxu1 }
 0x773   : > { %v1025_v3 = vpop.xlane.xlu1 %1024 }
 0x777   : > { %v866_v22 = vpop.xlane.xlu1 %865 }
 0x778   : > { %1796 = vrcp.f32 %v866_v22 }
 0x779   : > { %1798 = vrcp.f32 %v1025_v3 }
 0x77b   : > { %v1188_v38 = vpop.xlane.xlu0 %1187 }
 0x77c   : > { %1800 = vrcp.f32 %v1188_v38 }
 0x782   : > { %v1797_v34 = vpop.eup %1796 }
 0x783   : > { %v916_v36 = vmul.f32 %v1797_v34, %v909_v30  ;;  %v1799_v40 = vpop.eup %1798  ;;  %v1350_v44 = vpop.xlane.xlu0 %1349 }
 0x784   : > { %1802 = vrcp.f32 %v1350_v44 }
 0x785   : > { %v917_v37 = vpack.c.bf16 %v916_v36, %v916_v36 }
 0x786   : > { %v1801_v47 = vpop.eup %1800 }
 0x787   : > { %919 = vst.msk [vmem:[#allocation2] sm:$0xf] %vm918_vm9, %v917_v37 }
 0x78e   : > { %v1803_v56 = vpop.eup %1802 }
 0x7ba   : > { %v1070_v41 = vpop.f32.mrb[16].mxu1 }
 0x7bb   : > { %v1077_v42 = vmul.f32 %v1799_v40, %v1070_v41  ;;  %v1688_v16 = vpop.f32.mrb[17].mxu1 }
 0x7bc   : > { %v1073_v43 = vpop.f32.mrb[18].mxu1 }
 0x7bd   : > { %v1592_v45 = vpack.c.bf16 %v1077_v42, %v1077_v42  ;;  %v1689_v46 = vpop.f32.mrb[19].mxu1 }
 0x7bf   : > { %1082 = vrot.lane.b32.xlu0 %v1592_v45, %s1874_s21  ;;  %s2344_s21 = smov 24  }
 0x7c2   : > { %v1232_v48 = vpop.f32.mrb[20].mxu1 }
 0x7c3   : > { %v1239_v50 = vmul.f32 %v1801_v47, %v1232_v48  ;;  %v1700_v51 = vpop.f32.mrb[21].mxu1 }
 0x7c4   : > { %v1235_v52 = vpop.f32.mrb[22].mxu1 }
 0x7c5   : > { %v1593_v54 = vpack.c.bf16 %v1239_v50, %v1239_v50  ;;  %v1701_v55 = vpop.f32.mrb[23].mxu1 }
 0x7c7   : > { %1244 = vrot.lane.b32.xlu1 %v1593_v54, %s1876_s20  ;;  %s429_s20 = sand.u32 1, %s1858_s26  }
 0x7c8   : > { %s1556_s30 = sshll.u32 %s429_s20, 3  ;;  %s1480_s29 = scalar_lea.sflag [#allocation4], %s429_s20 }
 0x7c9   : > { %s431_s24 = scalar_lea.vmem [#allocation3], %s1556_s30 }
 0x7ca   : > { %v1394_v57 = vpop.f32.mrb[24].mxu1  ;;  %s1493_s22 = sshll.u32 %s431_s24, 4  ;;  %s2279_s22 = int_to_ptr.vmem [resolvable:$true] %s1493_s22 }
 0x7cb   : > { %v1401_v58 = vmul.f32 %v1803_v56, %v1394_v57  ;;  %v1712_v59 = vpop.f32.mrb[25].mxu1  ;;  %s1804_s30 = scalar_lea.vmem %s2279_s22, 128  ;;  %p1811_p0 = scmp.lt.s32.totalorder %s2279_s22, %s1809_s15 }
 0x7cc   : > { %v1397_v60 = vpop.f32.mrb[26].mxu1  ;;  %p1805_p11 = scmp.ne.s32.totalorder %s2279_s22, %s1804_s30  ;;  %p1812_p1 = scmp.lt.s32.totalorder %s1810_s0, %s1804_s30 }
 0x7cd   : > { %v1594_v61 = vpack.c.bf16 %v1401_v58, %v1401_v58  ;;  %v1713_v17 = vpop.f32.mrb[27].mxu1 }
 0x7ce   : > { %p1806_p12 = pnand %p1805_p11, %p1991_p5  ;;  %p1813_p2 = por %p1812_p1, %p1811_p0 }
 0x7cf   : > { %1406 = vrot.lane.b32.xlu1 %v1594_v61, %s2344_s21 }
 0x7d0   : > { %p1807_p13 = pneg %p1806_p12 }
 0x7d2   : > { %p1814_p3 = pnand %p1813_p2, %p1807_p13 }
 0x831   : > { %v1083_v62 = vpop.permute.xlu0 %1082 }
 0x832   : > { %1086 = vst.msk [vmem:[#allocation2] sm:$0xf] %vm1085_vm10, %v1083_v62 }
 0x839   : > { %v1245_v63 = vpop.permute.xlu1 %1244 }
 0x83a   : > { %1248 = vst.msk [vmem:[#allocation2] sm:$0xf] %vm1247_vm11, %v1245_v63 }
 0x841   : > { %v1407_v1 = vpop.permute.xlu1 %1406 }
 0x842   : > { %1410 = vst.msk [vmem:[#allocation2] sm:$0xf] %vm1409_vm12, %v1407_v1 }
 0x849   : > { %v1411_v0 = vld [vmem:[#allocation2] sm:$0xf] }
 0x84a   : > { %1719 = vmatmul.mubr.msk.bf16.vlgmr.msra.gmra.mrb[24].mxu0 %vm463_vm1, %v1411_v0 }
 0x91d   : > { %v1472_v4 = vpop.f32.mrb[24].mxu0 }
 0x91e   : > { %v1473_v7 = vadd.f32 %v1584_v2, %v1472_v4  ;;  %v1720_v8 = vpop.f32.mrb[25].mxu0 }
 0x91f   : > { %v1475_v9 = vpop.f32.mrb[26].mxu0 }
 0x920   : > { %v1721_v10 = vpop.f32.mrb[27].mxu0  ;;  %1478 = vst.msk [vmem:[%s431_s24] sm:$0xff] %vm463_vm1, %v1473_v7 }
 0x921   : > { %1817 = shalt.err (!%p1814_p3)
}
 0x922   : > { %s1818_s20 = scalar_lea.hbm %s2277_s1, 128  ;;  %s1822_s21 = scalar_lea.hbm %s2333_s13, 256 }
 0x923   : > { %p1819_p4 = scmp.ne.s32.totalorder %s2277_s1, %s1818_s20  ;;  %p1823_p9 = scmp.lt.u32.totalorder %s2277_s1, %s2333_s13 }
 0x924   : > { %p1824_p10 = scmp.lt.u32.totalorder %s1822_s21, %s1818_s20  ;;  %p1826_p12 = scmp.lt.u32.totalorder %s1818_s20, %s2277_s1 }
 0x925   : > { %p1820_p7 = pnand %p1819_p4, %p1991_p5 }
 0x926   : > { %p1825_p11 = por %p1824_p10, %p1823_p9 }
 0x927   : > { %p1821_p8 = pneg %p1820_p7 }
 0x928   : > { %p1827_p13 = por %p1826_p12, %p1825_p11 }
 0x92a   : > { %p1828_p0 = pnand %p1827_p13, %p1821_p8 }
 0x92c   : > { %1831 = shalt.err (!%p1828_p0)
}
 0x92d   : > { %1722 = dma.vmem_to_hbm [thread:$0]  (%p1991_p5), %s2279_s22, 128, %s2277_s1, %s1480_s29  }
 0x92e PF: > { %p1728_p1 = scmp.ge.s32.totalorder %s1866_s28, 2  ;;  %s1505_s30 = sand.u32 1, %s1854_s25  }
 0x92f   : > { %s1506_s0 = scalar_lea.sflag [#allocation4], %s1505_s30 }
 0x930   : > { %p1725_p2 = pnand %p1728_p1, %p1995_p6 }
 0x932   : > { %1849 = dma.done.wait (!%p1725_p2), %s1506_s0, 128  }
 0x933   : > { %1851 = vsyncadd (!%p1725_p2), %s1506_s0, 4294967168  ;;  %p23_p3 = scmp.ge.s32.totalorder %s1978_s14, 4   ;;  %s2345_s25 = smov %s1858_s26 }
 0x934   : > { %s2346_s26 = smov %s1862_s27  ;;  %s2347_s27 = smov %s1989_s17 }
 0x935   : > { %s2348_s28 = smov %s1978_s14  ;;  %25 = sbr.rel (!%p23_p3) target bundleno = 6 (0x6), region = 107 }
 0x93c   :  { %1511 = vsyncpa [#allocation4], 1 }
 0x93d   :  { %1513 = vsyncpa [#allocation4 + $0x1], 1 }

</bundles_post_ra>
